<compile_context>
chip_gen: v7x
topology: tpu7x:2x2x1
jax: 0.10.0
libtpu: 0.0.40
codegen_flags: <defaults>
</compile_context>

<pallas_src>
import math
from functools import partial

import jax
import jax.numpy as jnp
from jax.experimental import pallas as pl
from jax.experimental.pallas import tpu as pltpu


# ----------------------------------------------------------------------------
# Fused EMA lerp kernel (one call over the whole packed parameter slab)
# ----------------------------------------------------------------------------

LANES = 512            # slab lane width (multiple of 128 -> lane-dense stores)
MAX_BLOCK_ROWS = 1024  # (1024, 512) f32 tile = 2 MiB/array; 3 arrays x 2 bufs = 12 MiB


def _slab_geometry(total_elems):
    """Rows of the padded (rows, LANES) slab and the per-tile row count.

    Rows are sized so the lerp grid always has >= 2 steps ("parallel" axis can
    shard across v7x's two TensorCores, each with its own HBM path).
    """
    rows = max(8, -(-total_elems // LANES))
    rows = ((rows + 7) // 8) * 8                      # sublane multiple
    if rows <= 2 * MAX_BLOCK_ROWS:
        half = ((rows + 15) // 16) * 8                # ceil(rows/2) -> mult of 8
        return 2 * half, half                         # grid of exactly 2
    rows = ((rows + MAX_BLOCK_ROWS - 1) // MAX_BLOCK_ROWS) * MAX_BLOCK_ROWS
    return rows, MAX_BLOCK_ROWS


def _lerp_kernel(w_ref, ema_ref, cur_ref, out_ref):
    """out = ema + weight * (cur - ema)  (== torch.Tensor.lerp_)."""
    w = w_ref[0]
    ema = ema_ref[...]
    # TODO(synk): stream the live slab in bf16 (upcast here) to cut HBM traffic
    # 3N -> 2.5N; kept f32 so the tiny test matches the f32 reference exactly.
    cur = cur_ref[...].astype(jnp.float32)
    out_ref[...] = ema + (cur - ema) * w


def _fused_lerp(ema_slab, cur_slab, weight):
    """Single tiled, pipelined, in-place lerp over the whole (rows, LANES) slab."""
    rows, lanes = ema_slab.shape
    assert lanes % 128 == 0 and rows % 8 == 0
    block_rows = min(MAX_BLOCK_ROWS, rows)
    # Guarantee >= 2 grid steps so both v7x TensorCores stream HBM.
    if rows // block_rows < 2 and rows >= 16 and rows % 16 == 0:
        block_rows = rows // 2
    assert rows % block_rows == 0
    grid = (rows // block_rows,)
    block_bytes = block_rows * lanes * 4
    vmem_limit = max(4 << 20, 6 * block_bytes + (2 << 20))   # 3 arrays x 2 bufs
    w = jnp.asarray(weight, dtype=jnp.float32).reshape(1)    # 1-D SMEM scalar
    return pl.pallas_call(
        _lerp_kernel,
        out_shape=jax.ShapeDtypeStruct((rows, lanes), jnp.float32),
        grid=grid,
        in_specs=[
            pl.BlockSpec(memory_space=pltpu.MemorySpace.SMEM),        # weight
            pl.BlockSpec((block_rows, lanes), lambda i: (i, 0)),      # ema slab
            pl.BlockSpec((block_rows, lanes), lambda i: (i, 0)),      # live slab
        ],
        out_specs=pl.BlockSpec((block_rows, lanes), lambda i: (i, 0)),
        input_output_aliases={1: 0},   # update the shadow slab in place
        compiler_params=pltpu.CompilerParams(
            dimension_semantics=("parallel",),
            vmem_limit_bytes=vmem_limit),
    )(w, ema_slab, cur_slab)


@partial(jax.jit, donate_argnums=(0,))
def _ema_lerp_step(ema_slab, cur_slab, weight):
    """jit + donation so input_output_aliases={1:0} is a true in-place update."""
    return _fused_lerp(ema_slab, cur_slab, weight)


# ----------------------------------------------------------------------------
# 1x1 conv forward kernel (NCHW kept end-to-end; no transposes)
# ----------------------------------------------------------------------------

def _conv1x1_kernel(x_ref, w_ref, b_ref, o_ref):
    """o[n] = W @ x[n] + b   with x (Cin, tile_hw), W (Cout, Cin), b (Cout, 1)."""
    o_ref[0] = (
        jnp.dot(w_ref[...], x_ref[0], preferred_element_type=jnp.float32)
        + b_ref[...]
    )


def _pick_tile_hw(hw_pad, cin, cout, vmem_budget=8 << 20):
    """Largest lane-dense tile that divides hw_pad and respects a VMEM budget."""
    for t in (2048, 1024, 512, 256, 128):
        if hw_pad % t == 0 and 2 * (cin + cout) * t * 4 <= vmem_budget:
            return t
    return 128  # hw_pad is always a multiple of 128


def conv1x1_forward(x_nchw, weight, bias):
    """1x1 conv forward. x: (N, Cin, H, W), weight: (Cout, Cin), bias: (Cout,)."""
    n, cin, h, w = x_nchw.shape
    cout = weight.shape[0]
    hw = h * w
    hw_pad = ((hw + 127) // 128) * 128        # never fall back to unaligned HW
    x3d = x_nchw.reshape(n, cin, hw)          # pure reshape, no data movement
    if hw_pad != hw:
        x3d = jnp.pad(x3d, ((0, 0), (0, 0), (0, hw_pad - hw)))
    b2d = bias.reshape(cout, 1).astype(jnp.float32)
    w2d = weight.astype(jnp.float32)
    tile_hw = _pick_tile_hw(hw_pad, cin, cout)
    grid = (n, hw_pad // tile_hw)
    # TODO(synk): for real channel counts, cast to bf16 (keep
    # preferred_element_type=f32), pad Cin/Cout to 128 (v5e) / 256 (v6e/v7x),
    # and add a Cin-reduction grid axis with a VMEM accumulator; kept f32 here
    # so the tiny-channel test matches the f32 reference exactly.
    out3d = pl.pallas_call(
        _conv1x1_kernel,
        out_shape=jax.ShapeDtypeStruct((n, cout, hw_pad), jnp.float32),
        grid=grid,
        in_specs=[
            pl.BlockSpec((1, cin, tile_hw), lambda i, j: (i, 0, j)),  # activations
            pl.BlockSpec((cout, cin), lambda i, j: (0, 0)),           # weight (resident)
            pl.BlockSpec((cout, 1), lambda i, j: (0, 0)),             # bias (resident)
        ],
        out_specs=pl.BlockSpec((1, cout, tile_hw), lambda i, j: (i, 0, j)),
        compiler_params=pltpu.CompilerParams(
            dimension_semantics=("parallel", "parallel")),
    )(x3d, w2d, b2d)
    if hw_pad != hw:
        out3d = out3d[:, :, :hw]
    return out3d.reshape(n, cout, h, w)       # pure reshape back to NCHW


_conv1x1_forward_jit = jax.jit(conv1x1_forward)


# ----------------------------------------------------------------------------
# EMA wrapper (host-side control flow mirrors the PyTorch module; the lerp /
# forward hot paths run in Pallas kernels)
# ----------------------------------------------------------------------------

class EMA:
    def __init__(self, model_params, beta=0.9999, warmup_steps=100,
                 decay_period=10, inv_gamma=1.0, power=2.0 / 3.0,
                 min_value=0.0, decay_method="epoch_based", epochs=1000):
        self.beta = beta
        self.is_frozen = beta == 1.0
        self.warmup_steps = warmup_steps
        self.decay_period = decay_period
        self.decay_method = decay_method
        self.inv_gamma = inv_gamma
        self.power = power
        self.min_value = min_value
        self.epochs = epochs

        # Fixed parameter layout inside the packed slab.
        self._keys = list(model_params.keys())
        self._layout = {}
        off = 0
        for k in self._keys:
            shape = tuple(model_params[k].shape)
            size = int(math.prod(shape)) if shape else 1
            self._layout[k] = (off, size, shape)
            off += size
        self.total = off
        self.rows, self.block_rows = _slab_geometry(self.total)

        # deepcopy(model) -> shadow params, stored persistently as one padded
        # (rows, LANES) f32 slab; un-packed only when consumed (forward).
        self.ema_slab = self.pack(model_params)
        self.initted = False
        self.step = 0

    # --- packing helpers -----------------------------------------------------
    def pack(self, params):
        """Pack a dict of params into the (rows, LANES) slab layout.

        The trainer should keep its live params in this layout so the EMA
        update never re-packs on the hot path.
        """
        parts = [jnp.ravel(jnp.asarray(params[k])).astype(jnp.float32)
                 for k in self._keys]
        flat = jnp.concatenate(parts) if len(parts) > 1 else parts[0]
        pad = self.rows * LANES - self.total
        if pad:
            flat = jnp.pad(flat, (0, pad))      # keep pad region zeroed
        return flat.reshape(self.rows, LANES)

    def get_param(self, name):
        off, size, shape = self._layout[name]
        flat = self.ema_slab.reshape(-1)
        return flat[off:off + size].reshape(shape)

    # --- update logic (mirrors torch EMA.update) ------------------------------
    def update(self, live_slab):
        """live_slab: the live model params already packed in slab layout."""
        assert live_slab.shape == (self.rows, LANES)
        step = self.step
        self.step += 1
        if step != self.epochs - 1:
            if step % self.decay_period != 0:
                return
        if step <= self.warmup_steps:
            self._copy_from(live_slab)
            return
        if not self.initted:
            self._copy_from(live_slab)
            self.initted = True
        self._update_moving_average(live_slab)

    def update_from_params(self, network_params):
        """Convenience path for callers holding per-parameter tensors."""
        self.update(self.pack(network_params))

    def _copy_from(self, live_slab):
        # Explicit device copy: the shadow must own its storage (matches
        # torch's inplace copy_), and the donated lerp update must never
        # invalidate the trainer-owned live slab.
        self.ema_slab = jnp.array(live_slab, copy=True)

    def _update_moving_average(self, live_slab):
        if self.is_frozen:
            return
        current_decay = (self.get_current_decay()
                         if self.decay_method == "epoch_based" else self.beta)
        weight = 1.0 - current_decay
        # One fused, tiled, donated (true in-place) Pallas call for ALL params.
        self.ema_slab = _ema_lerp_step(self.ema_slab, live_slab,
                                       jnp.float32(weight))

    def get_current_decay(self):
        # note: self.step has already been incremented (matches torch code)
        epoch = max(self.step - self.warmup_steps - 1, 0.0)
        if epoch <= 0:
            return 0.0
        value = 1.0 - (1.0 + epoch / self.inv_gamma) ** (-self.power)
        return float(min(max(value, self.min_value), self.beta))

    # --- forward: self.ema_model(x) -------------------------------------------
    def forward(self, x):
        return _conv1x1_forward_jit(x, self.get_param("weight"),
                                    self.get_param("bias"))

    __call__ = forward


# ----------------------------------------------------------------------------
# main
# ----------------------------------------------------------------------------

if __name__ == "__main__":
    key = jax.random.PRNGKey(0)
    k_w, k_b, k_x, k_n, k_t = jax.random.split(key, 5)

    N, Cin, Cout, H, W = 2, 4, 8, 16, 16

    # synthetic wrapped model: 1x1 conv (Cout, Cin) + bias (Cout,)
    model_params = {
        "weight": jax.random.normal(k_w, (Cout, Cin), dtype=jnp.float32) * 0.1,
        "bias": jax.random.normal(k_b, (Cout,), dtype=jnp.float32) * 0.01,
    }

    ema = EMA(model_params, beta=0.9999, warmup_steps=2, decay_period=1,
              inv_gamma=1.0, power=2.0 / 3.0, min_value=0.0,
              decay_method="epoch_based", epochs=1000)

    # Trainer keeps the LIVE model params in the same packed slab layout, so
    # the per-step EMA update is a single donated Pallas call (no re-pack).
    live_slab = ema.pack(model_params)
    valid = (jnp.arange(ema.rows * LANES) < ema.total).astype(jnp.float32)
    valid = valid.reshape(ema.rows, LANES)     # keep the pad region zeroed

    # pure-JAX mirror of the EMA recurrence for a correctness check
    ref_ema = jnp.array(live_slab)
    ref_initted = False

    for step in range(8):
        drift = 0.01 * (step + 1)
        noise = jax.random.normal(jax.random.fold_in(k_n, step),
                                  (ema.rows, LANES), dtype=jnp.float32) * valid
        live_slab = live_slab + drift * noise   # "optimizer step" on packed params

        ema.update(live_slab)

        # --- reference recurrence (mirrors the torch schedule exactly) -------
        s_after = step + 1
        if step == ema.epochs - 1 or step % ema.decay_period == 0:
            if step <= ema.warmup_steps:
                ref_ema = live_slab
            else:
                if not ref_initted:
                    ref_ema = live_slab
                    ref_initted = True
                if not ema.is_frozen:
                    epoch = max(s_after - ema.warmup_steps - 1, 0.0)
                    if epoch <= 0:
                        d = 0.0
                    else:
                        d = 1.0 - (1.0 + epoch / ema.inv_gamma) ** (-ema.power)
                        d = float(min(max(d, ema.min_value), ema.beta))
                    w_ = 1.0 - d
                    ref_ema = ref_ema + (live_slab - ref_ema) * w_

    assert jnp.allclose(jax.block_until_ready(ema.ema_slab), ref_ema,
                        atol=1e-5), "EMA recurrence mismatch vs reference"

    # --- direct numeric check of the fused (donated, in-place) lerp ----------
    a = jax.random.normal(k_t, (16, LANES), dtype=jnp.float32)
    b = a * 0.5 + 1.0
    expected_lerp = a + (b - a) * 0.25        # computed BEFORE `a` is donated
    got_lerp = jax.block_until_ready(_ema_lerp_step(a, b, jnp.float32(0.25)))
    assert jnp.allclose(got_lerp, expected_lerp, atol=1e-6), "lerp mismatch"

    # --- forward pass through the EMA model (Pallas conv kernel), NCHW input --
    x = jax.random.normal(k_x, (N, Cin, H, W), dtype=jnp.float32)
    y = jax.block_until_ready(ema(x))

    w_ema = ema.get_param("weight")
    b_ema = ema.get_param("bias")
    ref = jnp.einsum("nchw,oc->nohw", x, w_ema) + b_ema[None, :, None, None]
    assert y.shape == (N, Cout, H, W)
    assert jnp.allclose(y, ref, atol=2e-4), "forward mismatch vs reference"

    print("KERNEL_OK")
</pallas_src>

<mosaic_0001>
module attributes {stable_mosaic.version = 11 : i64} {
  func.func @_lerp_kernel(%arg0: i32, %arg1: memref<1xf32, #tpu.memory_space<smem>>, %arg2: memref<8x512xf32, #tpu.memory_space<vmem>>, %arg3: memref<8x512xf32, #tpu.memory_space<vmem>>, %arg4: memref<8x512xf32, #tpu.memory_space<vmem>>) attributes {dimension_semantics = [#tpu.dimension_semantics<parallel>], iteration_bounds = array<i64: 2>, scalar_prefetch = 0 : i64, scratch_operands = 0 : i64, tpu.core_type = #tpu.core_type<tc>, window_params = [{transform_indices = @transform_0, window_bounds = array<i64: 1>}, {transform_indices = @transform_1, window_bounds = array<i64: 8, 512>}, {transform_indices = @transform_2, window_bounds = array<i64: 8, 512>}, {transform_indices = @transform_3, window_bounds = array<i64: 8, 512>}]} {
    %c0 = arith.constant 0 : index
    %0 = memref.load %arg1[%c0] : memref<1xf32, #tpu.memory_space<smem>>
    %c0_0 = arith.constant 0 : index
    %c0_1 = arith.constant 0 : index
    %1 = vector.load %arg2[%c0_0, %c0_1] : memref<8x512xf32, #tpu.memory_space<vmem>>, vector<8x512xf32>
    %c0_2 = arith.constant 0 : index
    %c0_3 = arith.constant 0 : index
    %2 = vector.load %arg3[%c0_2, %c0_3] : memref<8x512xf32, #tpu.memory_space<vmem>>, vector<8x512xf32>
    %3 = arith.subf %2, %1 : vector<8x512xf32>
    %4 = vector.broadcast %0 : f32 to vector<8x512xf32>
    %5 = arith.mulf %3, %4 : vector<8x512xf32>
    %6 = arith.addf %1, %5 : vector<8x512xf32>
    %c0_4 = arith.constant 0 : index
    %c0_5 = arith.constant 0 : index
    %7 = vector.load %arg4[%c0_4, %c0_5] : memref<8x512xf32, #tpu.memory_space<vmem>>, vector<8x512xf32>
    tpu.vector_store %arg4[%c0_4, %c0_5], %6 {strides = array<i32>} : memref<8x512xf32, #tpu.memory_space<vmem>>, vector<8x512xf32>,
    return
  }
  func.func @transform_0(%arg0: i32) -> i32 {
    %c0_i32 = arith.constant 0 : i32
    %c0_i32_0 = arith.constant 0 : i32
    return %c0_i32 : i32
  }
  func.func @transform_1(%arg0: i32) -> (i32, i32) {
    %c0_i32 = arith.constant 0 : i32
    %c0_i32_0 = arith.constant 0 : i32
    return %arg0, %c0_i32 : i32, i32
  }
  func.func @transform_2(%arg0: i32) -> (i32, i32) {
    %c0_i32 = arith.constant 0 : i32
    %c0_i32_0 = arith.constant 0 : i32
    return %arg0, %c0_i32 : i32, i32
  }
  func.func @transform_3(%arg0: i32) -> (i32, i32) {
    %c0_i32 = arith.constant 0 : i32
    %c0_i32_0 = arith.constant 0 : i32
    return %arg0, %c0_i32 : i32, i32
  }
}

</mosaic_0001>

<bundles_post_ra>
// kernel: _ema_lerp_step.1
= control target key start
LH: loop header
LB: loop body
LE: loop exit
PB: predicated region body
PF: predicated region fallthrough
CT: control target
= control target key end

     0   :  { %s799_s0 = inlined_call_operand.<no memory space> [shape: f32[1], index: 0, kind: input, shape index: {}]   ;;  %s800_s1 = inlined_call_operand.hbm [shape: f32[16,512], index: 1, kind: input, shape index: {}, may-alias: {1,3}]   ;;  %s801_s2 = inlined_call_operand.hbm [shape: f32[16,512], index: 2, kind: input, shape index: {}]   ;;  %s802_s3 = inlined_call_operand.hbm [shape: f32[16,512], index: 3, kind: output, shape index: {}, may-alias: {1,3}]  }
   0x1   :  { %8 = sst [smem:[#allocation2]] %s799_s0 }
   0x2   :  { %9 = vsyncpa [#allocation4], 0 }
   0x3   :  { %11 = vsyncpa [#allocation4 + $0x1], 0 }
   0x4   :  { %12 = vsyncpa [#allocation7], 0 }
   0x5   :  { %14 = vsyncpa [#allocation7 + $0x1], 0 }
   0x6   :  { %15 = vsyncpa [#allocation5], 0 }
   0x7   :  { %17 = vsyncpa [#allocation5 + $0x1], 0  ;;  %s590_s14 = smov 0   ;;  %s592_s15 = smov 0  }
   0x8   :  { %s594_s16 = smov 0   ;;  %s596_s17 = smov 0  }
   0x9 LB: > { %s611_s0 = sadd.s32 4294967295, %s562_s17   ;;  %s360_s18 = sadd.s32 4294967294, %s562_s17   ;;  %s562_s17 = sphi %s596_s17, %s821_s17   ;;  %s558_s16 = sphi %s594_s16, %s820_s16   ;;  %s554_s15 = sphi %s592_s15, %s819_s15   ;;  %s550_s14 = sphi %s590_s14, %s818_s14  }
   0xa   : > { %s615_s19 = sadd.s32 1, %s562_s17   ;;  %s51_s20 = sadd.s32 1, %s558_s16 }
   0xb   : > { %s48_s21 = ssub.s32 %s562_s17, %s615_s19  ;;  %p58_p0 = scmp.ne.s32.totalorder %s558_s16, %s554_s15 }
   0xc   : > { %p49_p1 = scmp.eq.s32.totalorder %s48_s21, 0  ;;  %p59_p2 = scmp.eq.s32.totalorder %s562_s17, 0 }
   0xd   : > { %p64_p3 = scmp.ne.s32.totalorder %s554_s15, %s550_s14  ;;  %p65_p4 = scmp.eq.s32.totalorder %s611_s0, 0 }
   0xe   : > { %s627_s22 = scalar_select %p49_p1, %s558_s16, %s51_s20  }
   0xf   : > { %p629_p5 = por %p59_p2, %p58_p0  ;;  %p633_p6 = por %p65_p4, %p64_p3 }
  0x10   : > { %p114_p7 = scmp.eq.s32.totalorder %s611_s0, 1  ;;  %p120_p8 = scmp.eq.s32.totalorder %s360_s18, 1 }
  0x11   : > { %s806_s24 = scalar_select %p633_p6, 1, 0 }
  0x12   : > { %p398_p10 = scmp.lt.s32.totalorder %s562_s17, 2  ;;  %p640_p11 = por %p114_p7, %p58_p0 }
  0x13   : > { %p644_p12 = por %p120_p8, %p64_p3  ;;  %s649_s27 = sand.u32 1, %s558_s16  }
  0x14   : > { %s807_s25 = scalar_select %p640_p11, 1, 0 }
  0x15   : > { %s808_s26 = scalar_select %p644_p12, 1, 0 }
  0x16   : > { %s378_s28 = sshll.u32 %s562_s17, 9  ;;  %s363_s29 = sshll.u32 %s649_s27, 5 }
  0x17   : > { %s658_s5 = scalar_lea.hbm %s800_s1, %s378_s28  ;;  %s147_s6 = scalar_lea.vmem [#allocation3], %s363_s29 }
  0x18   : > { %s155_s7 = sshll.u32 %s147_s6, 4  ;;  %p664_p13 = pnand %p398_p10, %p629_p5  ;;  %s668_s7 = int_to_ptr.vmem [resolvable:$true] %s155_s7 }
  0x19   : > { %s144_s9 = scalar_lea.sflag [#allocation4], %s649_s27  ;;  %s432_s10 = scalar_lea.hbm %s658_s5, 512 }
  0x1a   : > { %p433_p2 = scmp.ne.s32.totalorder %s658_s5, %s432_s10  ;;  %p434_p3 = pneg %p664_p13 }
  0x1b   : > { %s437_s13 = scalar_lea.hbm %s800_s1, 1024  ;;  %p438_p5 = scmp.lt.u32.totalorder %s658_s5, %s800_s1 }
  0x1c   : > { %p435_p4 = pnand %p434_p3, %p433_p2  ;;  %p439_p8 = scmp.lt.u32.totalorder %s437_s13, %s432_s10 }
  0x1d   : > { %p441_p9 = scmp.lt.u32.totalorder %s432_s10, %s658_s5 }
  0x1e   : > { %p436_p7 = pneg %p435_p4  ;;  %p440_p10 = por %p439_p8, %p438_p5 }
  0x20   : > { %p442_p0 = por %p441_p9, %p440_p10 }
  0x22   : > { %p443_p1 = pnand %p442_p0, %p436_p7 }
  0x24   : > { %446 = shalt.err (!%p443_p1)
}
  0x25   : > { %s447_s21 = scalar_lea.vmem %s668_s7, 512  ;;  %s564_s23 = smov [#allocation3]  }
  0x26   : > { %p448_p2 = scmp.ne.s32.totalorder %s668_s7, %s447_s21  ;;  %s452_s30 = sshll.u32 %s564_s23, 4  ;;  %s453_s30 = int_to_ptr.vmem [resolvable:$false] %s452_s30 }
  0x27   : > { %s454_s4 = scalar_lea.vmem %s453_s30, 1024  ;;  %p455_p11 = scmp.lt.s32.totalorder %s668_s7, %s453_s30 }
  0x28   : > { %p450_p4 = pnand %p448_p2, %p434_p3  ;;  %p456_p5 = scmp.lt.s32.totalorder %s454_s4, %s447_s21 }
  0x2a   : > { %p451_p12 = pneg %p450_p4  ;;  %p457_p8 = por %p456_p5, %p455_p11 }
  0x2c   : > { %p458_p9 = pnand %p457_p8, %p451_p12 }
  0x2e   : > { %461 = shalt.err (!%p458_p9)
}
  0x2f   : > { %390 = dma.hbm_to_vmem [thread:$0]  (!%p664_p13), %s658_s5, 512, %s668_s7, %s144_s9  }
  0x30   : > { %p810_p0 = scmp.lt.s32.totalorder %s562_s17, 3  ;;  %p811_p1 = scmp.ge.s32.totalorder %s562_s17, 1 }
  0x31   : > { %s711_s12 = scalar_lea.hbm %s801_s2, %s378_s28  ;;  %s166_s13 = scalar_lea.vmem [#allocation6], %s363_s29 }
  0x32   : > { %p702_p7 = pnand %p811_p1, %p810_p0  ;;  %s174_s18 = sshll.u32 %s166_s13, 4  ;;  %s175_s18 = int_to_ptr.vmem [resolvable:$true] %s174_s18 }
  0x33   : > { %s163_s5 = scalar_lea.sflag [#allocation7], %s649_s27  ;;  %s462_s7 = scalar_lea.hbm %s711_s12, 512 }
  0x34   : > { %s812_s6 = scalar_select %p702_p7, 1, 0 }
  0x35   : > { %p463_p11 = scmp.ne.s32.totalorder %s711_s12, %s462_s7  ;;  %s467_s28 = scalar_lea.hbm %s801_s2, 1024 }
  0x36   : > { %p468_p2 = scmp.lt.u32.totalorder %s711_s12, %s801_s2  ;;  %p469_p4 = scmp.lt.u32.totalorder %s467_s28, %s462_s7 }
  0x37   : > { %p465_p12 = pnand %p463_p11, %p434_p3  ;;  %p471_p8 = scmp.lt.u32.totalorder %s462_s7, %s711_s12 }
  0x38   : > { %p470_p5 = por %p469_p4, %p468_p2 }
  0x39   : > { %p466_p10 = pneg %p465_p12 }
  0x3a   : > { %p472_p9 = por %p471_p8, %p470_p5 }
  0x3c   : > { %p473_p0 = pnand %p472_p9, %p466_p10 }
  0x3e   : > { %476 = shalt.err (!%p473_p0)
}
  0x3f   : > { %s477_s27 = scalar_lea.vmem %s175_s18, 512  ;;  %s565_s29 = smov [#allocation6]  }
  0x40   : > { %p478_p1 = scmp.ne.s32.totalorder %s175_s18, %s477_s27  ;;  %s482_s30 = sshll.u32 %s565_s29, 4  ;;  %s483_s30 = int_to_ptr.vmem [resolvable:$false] %s482_s30 }
  0x41   : > { %s484_s4 = scalar_lea.vmem %s483_s30, 1024  ;;  %p485_p6 = scmp.lt.s32.totalorder %s175_s18, %s483_s30 }
  0x42   : > { %p480_p11 = pnand %p478_p1, %p434_p3  ;;  %p486_p7 = scmp.lt.s32.totalorder %s484_s4, %s477_s27 }
  0x44   : > { %p481_p12 = pneg %p480_p11  ;;  %p487_p2 = por %p486_p7, %p485_p6 }
  0x46   : > { %p488_p4 = pnand %p487_p2, %p481_p12 }
  0x48   : > { %491 = shalt.err (!%p488_p4)
}
  0x49   : > { %393 = dma.hbm_to_vmem [thread:$0]  (!%p664_p13), %s711_s12, 512, %s175_s18, %s163_s5  }
  0x4a   : > { %p813_p10 = scmp.ne.s32.totalorder %s812_s6, 0 }
  0x4b   : > { %s738_s10 = sand.u32 (!%p813_p10), 1, %s554_s15   ;;  %p814_p3 = scmp.ne.s32.totalorder (!%p813_p10), %s806_s24, 0 }
  0x4c   : > { %183 = sbr.rel (%p813_p10) target bundleno = 112 (0x70), region = 32  ;;  %s370_s11 = sshll.u32 (!%p813_p10), %s738_s10, 5 }
  0x4d   : > { %s186_s13 = scalar_lea.sflag (!%p813_p10), [#allocation4], %s738_s10  ;;  %s189_s7 = scalar_lea.vmem (!%p813_p10), [#allocation3], %s370_s11 }
  0x53   : > { %537 = dma.done.wait (%p814_p3), %s186_s13, 512  }
  0x54   : > { %539 = vsyncadd (%p814_p3), %s186_s13, 4294966784  ;;  %s195_s8 = scalar_lea.sflag [#allocation7], %s738_s10  ;;  %s198_s12 = scalar_lea.vmem [#allocation6], %s370_s11 }
  0x55   : > { %541 = dma.done.wait (%p814_p3), %s195_s8, 512  }
  0x56   : > { %543 = vsyncadd (%p814_p3), %s195_s8, 4294966784  ;;  %s226_s6 = sld [smem:[#allocation2]]  ;;  %v227_v0 = vld [vmem:[%s189_s7] sm:$0xff]  ;;  %v228_v3 = vld [vmem:[%s189_s7 + $0x8] sm:$0xff]  ;;  %s225_s18 = scalar_lea.vmem [#allocation8], %s370_s11 }
  0x57   : > { %v231_v1 = vld [vmem:[%s198_s12] sm:$0xff]  ;;  %v232_v5 = vld [vmem:[%s198_s12 + $0x8] sm:$0xff]  ;;  %v229_v6 = vld [vmem:[%s189_s7 + $0x10] sm:$0xff]  ;;  %s267_s24 = sshll.u32 %s225_s18, 4  ;;  %s380_s5 = sshll.u32 %s611_s0, 9  ;;  %s752_s24 = int_to_ptr.vmem [resolvable:$true] %s267_s24 }
  0x58   : > { %v235_v4 = vsub.f32 %v231_v1, %v227_v0  ;;  %v233_v7 = vld [vmem:[%s198_s12 + $0x10] sm:$0xff]  ;;  %v236_v8 = vsub.f32 %v232_v5, %v228_v3  ;;  %v230_v10 = vld [vmem:[%s189_s7 + $0x18] sm:$0xff]  ;;  %s757_s28 = scalar_lea.hbm %s802_s3, %s380_s5  ;;  %s253_s0 = scalar_lea.sflag [#allocation5], %s738_s10 }
  0x59   : > { %v237_v9 = vsub.f32 %v233_v7, %v229_v6  ;;  %v234_v11 = vld [vmem:[%s198_s12 + $0x18] sm:$0xff]  ;;  %s492_s21 = scalar_lea.vmem %s752_s24, 512  ;;  %p815_p13 = scmp.ne.s32.totalorder %s807_s25, 0 }
  0x5a   : > { %v238_v13 = vsub.f32 %v234_v11, %v230_v10  ;;  %p493_p6 = scmp.ne.s32.totalorder %s752_s24, %s492_s21  ;;  %s566_s23 = smov [#allocation8]  }
  0x5b   : > { %s496_s27 = sshll.u32 %s566_s23, 4  ;;  %s497_s27 = int_to_ptr.vmem [resolvable:$false] %s496_s27 }
  0x5c   : > { %v239_v2 = vstv %s226_s6  ;;  %p494_p7 = pnand %p493_p6, %p815_p13  ;;  %s498_s29 = scalar_lea.vmem %s497_s27, 1024 }
  0x5d   : > { %v240_v12 = vmul.f32 %v239_v2, %v235_v4  ;;  %v241_v14 = vmul.f32 %v239_v2, %v236_v8  ;;  %v242_v15 = vmul.f32 %v239_v2, %v237_v9  ;;  %v243_v17 = vmul.f32 %v239_v2, %v238_v13  ;;  %p499_p8 = scmp.lt.s32.totalorder %s752_s24, %s497_s27  ;;  %p500_p9 = scmp.lt.s32.totalorder %s498_s29, %s492_s21 }
  0x5e   : > { %p495_p5 = pneg %p494_p7 }
  0x5f   : > { %v244_v16 = vadd.f32 %v240_v12, %v227_v0  ;;  %v245_v18 = vadd.f32 %v241_v14, %v228_v3  ;;  %v246_v19 = vadd.f32 %v242_v15, %v229_v6  ;;  %v247_v20 = vadd.f32 %v243_v17, %v230_v10  ;;  %p501_p0 = por %p500_p9, %p499_p8 }
  0x61   : > { %248 = vst [vmem:[%s225_s18] sm:$0xff] %v244_v16  ;;  %249 = vst [vmem:[%s225_s18 + $0x8] sm:$0xff] %v245_v18  ;;  %p502_p1 = pnand %p501_p0, %p495_p5 }
  0x62   : > { %250 = vst [vmem:[%s225_s18 + $0x10] sm:$0xff] %v246_v19  ;;  %251 = vst [vmem:[%s225_s18 + $0x18] sm:$0xff] %v247_v20 }
  0x63   : > { %505 = shalt.err (!%p502_p1)
}
  0x64   : > { %s506_s30 = scalar_lea.hbm %s757_s28, 512  ;;  %s510_s11 = scalar_lea.hbm %s802_s3, 1024 }
  0x65   : > { %p507_p11 = scmp.ne.s32.totalorder %s757_s28, %s506_s30  ;;  %p511_p4 = scmp.lt.u32.totalorder %s757_s28, %s802_s3 }
  0x66   : > { %p512_p10 = scmp.lt.u32.totalorder %s510_s11, %s506_s30  ;;  %p514_p6 = scmp.lt.u32.totalorder %s506_s30, %s757_s28 }
  0x67   : > { %p508_p12 = pnand %p507_p11, %p815_p13 }
  0x68   : > { %p513_p3 = por %p512_p10, %p511_p4 }
  0x69   : > { %p509_p2 = pneg %p508_p12 }
  0x6a   : > { %p515_p7 = por %p514_p6, %p513_p3 }
  0x6c   : > { %p516_p5 = pnand %p515_p7, %p509_p2 }
  0x6e   : > { %519 = shalt.err (!%p516_p5)
}
  0x6f   : > { %385 = dma.vmem_to_hbm [thread:$0]  (%p815_p13), %s752_s24, 512, %s757_s28, %s253_s0  }
  0x70 PF: > { %s279_s8 = sand.u32 1, %s550_s14   ;;  %p816_p8 = scmp.ne.s32.totalorder %s808_s26, 0 }
  0x71   : > { %p817_p9 = scmp.ge.s32.totalorder %s562_s17, 2  ;;  %s280_s12 = scalar_lea.sflag [#allocation5], %s279_s8 }
  0x73   : > { %p395_p0 = pnand %p817_p9, %p816_p8 }
  0x75   : > { %545 = dma.done.wait (!%p395_p0), %s280_s12, 512  }
  0x76   : > { %547 = vsyncadd (!%p395_p0), %s280_s12, 4294966784  ;;  %p20_p1 = scmp.ge.s32.totalorder %s615_s19, 4   ;;  %s818_s14 = smov %s554_s15 }
  0x77   : > { %s819_s15 = smov %s558_s16  ;;  %s820_s16 = smov %s627_s22 }
  0x78   : > { %s821_s17 = smov %s615_s19  ;;  %22 = sbr.rel (!%p20_p1) target bundleno = 9 (0x9), region = 90 }
  0x7f   :  { %285 = vsyncpa [#allocation4], 1 }
  0x80   :  { %287 = vsyncpa [#allocation4 + $0x1], 1 }
  0x81   :  { %288 = vsyncpa [#allocation7], 1 }
  0x82   :  { %290 = vsyncpa [#allocation7 + $0x1], 1 }
  0x83   :  { %291 = vsyncpa [#allocation5], 1 }
  0x84   :  { %293 = vsyncpa [#allocation5 + $0x1], 1 }

</bundles_post_ra>
